<compile_context>
chip_gen: v6e
topology: v6e:2x2x1
jax: 0.10.0
libtpu: 0.0.40
codegen_flags: <defaults>
</compile_context>

<pallas_src>
import functools

import jax
import jax.numpy as jnp
from jax.experimental import pallas as pl
from jax.experimental.pallas import tpu as pltpu


def _round_up(x, m):
    return (x + m - 1) // m * m


def _label_smoothing_kernel(logits_ref, target_ref, out_ref, *,
                            n_rows, confidence, smooth_val, block_cols):
    """One class-major (C, TR) tile -> per-row smoothed NLL written as (1, TR)."""
    i = pl.program_id(0)

    x = logits_ref[...].astype(jnp.float32)     # (C, TR): classes on sublanes
    tgt = target_ref[...]                       # (1, TR) int32, lane-dense
    c, tr = x.shape

    # Numerically stable logsumexp pieces over the class (sublane) axis.
    m = jnp.max(x, axis=0, keepdims=True)                        # (1, TR)
    shifted = x - m                                              # (C, TR)
    sumexp = jnp.sum(jnp.exp(shifted), axis=0, keepdims=True)    # (1, TR)

    # Fused weighted class reduction.  true_dist sums to 1 over classes, so
    #   loss_row = logsumexp(x) - sum_c(w_c * x_c)
    #            = log(sumexp) - sum_c(w_c * shifted_c)        (the max cancels)
    # with w_c = confidence at the target class, smooth_val elsewhere.
    class_ids = jax.lax.broadcasted_iota(jnp.int32, (c, tr), 0)
    w = jnp.where(class_ids == tgt, confidence, smooth_val)      # (C, TR)
    wsum = jnp.sum(w * shifted, axis=0, keepdims=True)           # (1, TR)
    per_row = jnp.log(sumexp) - wsum                             # (1, TR)

    # Zero columns past the true batch size in a padded last tile (keep this a
    # select, not a multiply: padded lanes may hold inf/NaN from exp of
    # unspecified padding).
    col_ids = i * block_cols + jax.lax.broadcasted_iota(jnp.int32, (1, tr), 1)
    out_ref[...] = jnp.where(col_ids < n_rows, per_row, 0.0)


def label_smoothing_loss(logits, target, *, classes=30, smoothing=0.1,
                         block_cols=8192):
    """logits: (N, C) float (any float dtype), target: (N,) int.

    Returns the scalar f32 loss
        mean_n sum_c(-true_dist[n, c] * log_softmax(logits)[n, c])
    with torch scatter-replace label-smoothing semantics (matches the module).

    block_cols is the per-step row tile (rows live on the 128-lane axis).
    VMEM use is ~384 * block_cols bytes (padded-tile math, double-buffered),
    so the default 8192 (~3 MiB) is safe on v5e/v6e/v7x scoped-VMEM defaults;
    it can be raised to ~32K (v5e, 16 MiB) or higher on v6e/v7x if the
    ~0.35 us/step grid overhead ever becomes visible.
    """
    n, c = logits.shape
    assert c == classes

    # Class-major view: rows -> lanes, classes -> sublanes.
    logits_t = logits.T                                   # (C, N)
    target_row = target.astype(jnp.int32).reshape(1, n)   # (1, N) lane-dense

    tr = min(_round_up(n, 128), _round_up(block_cols, 128))
    grid = (pl.cdiv(n, tr),)

    kernel = functools.partial(
        _label_smoothing_kernel,
        n_rows=n,
        confidence=1.0 - smoothing,
        smooth_val=smoothing / (classes - 1),
        block_cols=tr,
    )

    per_row = pl.pallas_call(
        kernel,
        out_shape=jax.ShapeDtypeStruct((1, n), jnp.float32),
        grid_spec=pltpu.PrefetchScalarGridSpec(
            num_scalar_prefetch=0,
            grid=grid,
            in_specs=[
                pl.BlockSpec((classes, tr), lambda i: (0, i)),  # logits (C, TR)
                pl.BlockSpec((1, tr), lambda i: (0, i)),        # target (1, TR)
            ],
            out_specs=pl.BlockSpec((1, tr), lambda i: (0, i)),  # lane-dense out
        ),
        compiler_params=pltpu.CompilerParams(
            # Each tile is independent -> megacore-sharded across both TCs on v7x.
            dimension_semantics=("parallel",),
        ),
    )(logits_t, target_row)

    # Tiny O(N) scalar reduce in the wrapper (N*4 B next to 30*N*4 B of logits).
    return jnp.sum(per_row) / jnp.float32(n)


def _reference_loss(logits, target, classes=30, smoothing=0.1):
    """Pure-JAX reference mirroring the PyTorch module."""
    logp = jax.nn.log_softmax(logits.astype(jnp.float32), axis=-1)
    confidence = 1.0 - smoothing
    smooth_val = smoothing / (classes - 1)
    onehot = jax.nn.one_hot(target, classes, dtype=jnp.float32)
    true_dist = smooth_val + onehot * (confidence - smooth_val)
    return jnp.mean(jnp.sum(-true_dist * logp, axis=-1))


if __name__ == "__main__":
    key = jax.random.PRNGKey(0)
    k_logits, k_target = jax.random.split(key)

    classes = 30
    smoothing = 0.1

    # Case 1: small batch, single grid step (block padded past N=8).
    batch = 8
    logits = jax.random.normal(k_logits, (batch, classes), dtype=jnp.float32)
    target = jax.random.randint(k_target, (batch,), 0, classes, dtype=jnp.int32)
    loss = jax.block_until_ready(
        label_smoothing_loss(logits, target, classes=classes, smoothing=smoothing))
    ref = _reference_loss(logits, target, classes=classes, smoothing=smoothing)
    assert jnp.allclose(loss, ref, atol=1e-5, rtol=1e-5), (loss, ref)

    # Case 2: multi-step grid with a partial last tile (exercises column
    # masking and the parallel grid axis).
    batch2 = 200
    logits2 = jax.random.normal(k_logits, (batch2, classes), dtype=jnp.float32)
    target2 = jax.random.randint(k_target, (batch2,), 0, classes, dtype=jnp.int32)
    loss2 = jax.block_until_ready(
        label_smoothing_loss(logits2, target2, classes=classes,
                             smoothing=smoothing, block_cols=128))
    ref2 = _reference_loss(logits2, target2, classes=classes, smoothing=smoothing)
    assert jnp.allclose(loss2, ref2, atol=1e-5, rtol=1e-5), (loss2, ref2)

    # Case 3: bf16 logits in HBM, upcast to f32 inside the kernel.
    logits3 = logits2.astype(jnp.bfloat16)
    loss3 = jax.block_until_ready(
        label_smoothing_loss(logits3, target2, classes=classes,
                             smoothing=smoothing, block_cols=128))
    ref3 = _reference_loss(logits3, target2, classes=classes, smoothing=smoothing)
    assert jnp.allclose(loss3, ref3, atol=1e-4, rtol=1e-4), (loss3, ref3)

    print("KERNEL_OK")
</pallas_src>

<mosaic_0001>
module attributes {stable_mosaic.version = 11 : i64} {
  func.func @_label_smoothing_kernel(%arg0: i32, %arg1: memref<30x128xf32, #tpu.memory_space<vmem>>, %arg2: memref<1x128xi32, #tpu.memory_space<vmem>>, %arg3: memref<1x128xf32, #tpu.memory_space<vmem>>) attributes {dimension_semantics = [#tpu.dimension_semantics<parallel>], iteration_bounds = array<i64: 1>, scalar_prefetch = 0 : i64, scratch_operands = 0 : i64, tpu.core_type = #tpu.core_type<tc>, window_params = [{transform_indices = @transform_0, window_bounds = array<i64: 30, 128>}, {transform_indices = @transform_1, window_bounds = array<i64: 1, 128>}, {transform_indices = @transform_2, window_bounds = array<i64: 1, 128>}]} {
    %c0 = arith.constant 0 : index
    %c0_0 = arith.constant 0 : index
    %0 = vector.load %arg1[%c0, %c0_0] : memref<30x128xf32, #tpu.memory_space<vmem>>, vector<30x128xf32>
    %c0_1 = arith.constant 0 : index
    %c0_2 = arith.constant 0 : index
    %1 = vector.load %arg2[%c0_1, %c0_2] : memref<1x128xi32, #tpu.memory_space<vmem>>, vector<1x128xi32>
    %cst = arith.constant dense<0xFF800000> : vector<128xf32>
    %2 = vector.multi_reduction <maximumf>, %0, %cst [0] : vector<30x128xf32> to vector<128xf32>
    %3 = vector.shape_cast %2 : vector<128xf32> to vector<1x128xf32>
    %4 = vector.broadcast %3 : vector<1x128xf32> to vector<30x128xf32>
    %5 = arith.subf %0, %4 : vector<30x128xf32>
    %6 = math.exp %5 : vector<30x128xf32>
    %cst_3 = arith.constant dense<0.000000e+00> : vector<128xf32>
    %7 = vector.multi_reduction <add>, %6, %cst_3 [0] : vector<30x128xf32> to vector<128xf32>
    %8 = vector.shape_cast %7 : vector<128xf32> to vector<1x128xf32>
    %9 = tpu.iota {dimensions = array<i32: 0>} : vector<30x128xi32>
    %10 = vector.broadcast %1 : vector<1x128xi32> to vector<30x128xi32>
    %11 = arith.cmpi eq, %9, %10 : vector<30x128xi32>
    %cst_4 = arith.constant 0.899999976 : f32
    %cst_5 = arith.constant 0.00344827585 : f32
    %12 = vector.broadcast %cst_4 : f32 to vector<30x128xf32>
    %13 = vector.broadcast %cst_5 : f32 to vector<30x128xf32>
    %14 = arith.select %11, %12, %13 : vector<30x128xi1>, vector<30x128xf32>
    %15 = arith.mulf %14, %5 : vector<30x128xf32>
    %cst_6 = arith.constant dense<0.000000e+00> : vector<128xf32>
    %16 = vector.multi_reduction <add>, %15, %cst_6 [0] : vector<30x128xf32> to vector<128xf32>
    %17 = vector.shape_cast %16 : vector<128xf32> to vector<1x128xf32>
    %18 = math.log %8 : vector<1x128xf32>
    %19 = arith.subf %18, %17 : vector<1x128xf32>
    %c128_i32 = arith.constant 128 : i32
    %20 = arith.muli %arg0, %c128_i32 : i32
    %21 = tpu.iota {dimensions = array<i32: 1>} : vector<1x128xi32>
    %22 = vector.broadcast %20 : i32 to vector<1x128xi32>
    %23 = arith.addi %22, %21 : vector<1x128xi32>
    %c8_i32 = arith.constant 8 : i32
    %24 = vector.broadcast %c8_i32 : i32 to vector<1x128xi32>
    %25 = arith.cmpi slt, %23, %24 : vector<1x128xi32>
    %cst_7 = arith.constant 0.000000e+00 : f32
    %26 = vector.broadcast %cst_7 : f32 to vector<1x128xf32>
    %27 = arith.select %25, %19, %26 : vector<1x128xi1>, vector<1x128xf32>
    %c0_8 = arith.constant 0 : index
    %c0_9 = arith.constant 0 : index
    %28 = vector.load %arg3[%c0_8, %c0_9] : memref<1x128xf32, #tpu.memory_space<vmem>>, vector<1x128xf32>
    tpu.vector_store %arg3[%c0_8, %c0_9], %27 {strides = array<i32>} : memref<1x128xf32, #tpu.memory_space<vmem>>, vector<1x128xf32>,
    return
  }
  func.func @transform_0(%arg0: i32) -> (i32, i32) {
    %c0_i32 = arith.constant 0 : i32
    %c0_i32_0 = arith.constant 0 : i32
    return %c0_i32, %arg0 : i32, i32
  }
  func.func @transform_1(%arg0: i32) -> (i32, i32) {
    %c0_i32 = arith.constant 0 : i32
    %c0_i32_0 = arith.constant 0 : i32
    return %c0_i32, %arg0 : i32, i32
  }
  func.func @transform_2(%arg0: i32) -> (i32, i32) {
    %c0_i32 = arith.constant 0 : i32
    %c0_i32_0 = arith.constant 0 : i32
    return %c0_i32, %arg0 : i32, i32
  }
}

</mosaic_0001>

<bundles_post_ra>
// kernel: tpu_custom_call.1
= control target key start
LH: loop header
LB: loop body
LE: loop exit
PB: predicated region body
PF: predicated region fallthrough
CT: control target
= control target key end

     0   :  { %vm17_vm0 = vcmask 1045504   ;;  %s179_s0 = inlined_call_operand.vmem [shape: f32[30,8], index: 0, kind: input, shape index: {}]   ;;  %s180_s1 = inlined_call_operand.vmem [shape: s32[1,8], index: 1, kind: input, shape index: {}]   ;;  %s181_s2 = inlined_call_operand.hbm [shape: f32[1,8], index: 2, kind: output, shape index: {}]  }
   0x1   :  { %v12_v0 = vld [vmem:[%s179_s0] sm:$0xff]  ;;  %v13_v1 = vld [vmem:[%s179_s0 + $0x8] sm:$0xff]  ;;  %v14_v2 = vld [vmem:[%s179_s0 + $0x10] sm:$0xff] }
   0x2   :  { %v15_v3 = vld [vmem:[%s179_s0 + $0x18] sm:$0x3f]  ;;  %v19_v4 = vmax.f32 %v12_v0, %v13_v1 }
   0x3   :  { %7 = vsyncpa [#allocation3], 0  ;;  %v18_v5 = vsel %vm17_vm0, %v15_v3, -inf  ;;  %v50_v12 = vlaneseq  ;;  %v106_v25 = vld [vmem:[%s180_s1] ss:$0 sm:$0xff]  ;;  %s142_s1 = smov [#allocation2]  }
   0x4   :  { %v20_v6 = vmax.f32 %v14_v2, %v18_v5  ;;  %v141_v28 = vmov 0.0034482758   ;;  %s98_s18 = sshll.u32 %s142_s1, 4  ;;  %s99_s18 = int_to_ptr.vmem [resolvable:$true] %s98_s18 }
   0x5   :  { %v51_v15 = vshrl.u32 %v50_v12, 7  ;;  %v86_v60 = vand.u32 127, %v50_v12  ;;  %s119_s19 = scalar_lea.vmem %s99_s18, 16  ;;  %s123_s20 = scalar_lea.vmem %s99_s18, 32 }
   0x6   :  { %v21_v7 = vmax.f32 %v19_v4, %v20_v6  ;;  %p120_p0 = scmp.ne.s32.totalorder %s99_s18, %s119_s19  ;;  %p124_p1 = scmp.lt.s32.totalorder %s99_s18, %s99_s18 }
   0x7   :  { %v52_v24 = vadd.s32 8, %v51_v15  ;;  %v53_v26 = vadd.s32 16, %v51_v15  ;;  %vm59_vm1 = vcmp.eq.s32.totalorder %v51_v15, %v106_v25  ;;  %v54_v27 = vadd.s32 24, %v51_v15  ;;  %p125_p2 = scmp.lt.s32.totalorder %s123_s20, %s119_s19 }
   0x8   :  { %v22_v8 = vrot.slane %v21_v7, 4  ;;  %v63_v29 = vsel %vm59_vm1, 0.9, %v141_v28  ;;  %vm89_vm5 = vcmp.lt.s32.totalorder %v86_v60, 8 }
   0x9   :  { %vm60_vm2 = vcmp.eq.s32.totalorder %v52_v24, %v106_v25  ;;  %vm61_vm3 = vcmp.eq.s32.totalorder %v53_v26, %v106_v25  ;;  %vm62_vm4 = vcmp.eq.s32.totalorder %v54_v27, %v106_v25  ;;  %p126_p3 = por %p125_p2, %p124_p1 }
   0xa   :  { %v23_v9 = vmax.f32 %v21_v7, %v22_v8  ;;  %v64_v30 = vsel %vm60_vm2, 0.9, %v141_v28  ;;  %v65_v33 = vsel %vm61_vm3, 0.9, %v141_v28  ;;  %v66_v34 = vsel %vm62_vm4, 0.9, %v141_v28 }
   0xb   :  { %p127_p4 = pnand %p126_p3, %p120_p0 }
   0xc   :  { %v24_v10 = vrot.slane %v23_v9, 2 }
   0xe   :  { %v25_v11 = vmax.f32 %v23_v9, %v24_v10 }
  0x10   :  { %v26_v13 = vrot.slane %v25_v11, 1 }
  0x12   :  { %v27_v14 = vmax.f32 %v25_v11, %v26_v13 }
  0x14   :  { %v28_v16 = vsub.f32 %v12_v0, %v27_v14  ;;  %v29_v17 = vsub.f32 %v13_v1, %v27_v14  ;;  %v30_v18 = vsub.f32 %v14_v2, %v27_v14  ;;  %v31_v19 = vsub.f32 %v15_v3, %v27_v14 }
  0x16   :  { %v32_v20 = vmul.f32 1.442695, %v28_v16  ;;  %v34_v21 = vmul.f32 1.442695, %v29_v17  ;;  %v36_v22 = vmul.f32 1.442695, %v30_v18  ;;  %v67_v31 = vmul.f32 %v63_v29, %v28_v16 }
  0x17   :  { %v38_v23 = vmul.f32 1.442695, %v31_v19  ;;  %v68_v32 = vmul.f32 %v64_v30, %v29_v17  ;;  %v69_v36 = vmul.f32 %v65_v33, %v30_v18  ;;  %v70_v39 = vmul.f32 %v66_v34, %v31_v19 }
  0x18   :  { %109 = vpow2.f32 %v32_v20 }
  0x19   :  { %111 = vpow2.f32 %v34_v21  ;;  %v71_v37 = vadd.f32 %v68_v32, %v67_v31  ;;  %v73_v46 = vsel %vm17_vm0, %v70_v39, 0.0 }
  0x1a   :  { %113 = vpow2.f32 %v36_v22 }
  0x1b   :  { %115 = vpow2.f32 %v38_v23  ;;  %v72_v45 = vadd.f32 %v71_v37, %v69_v36 }
  0x1d   :  { %v74_v49 = vadd.f32 %v73_v46, %v72_v45 }
  0x1f   :  { %v75_v52 = vrot.slane %v74_v49, 4 }
  0x21   :  { %v76_v55 = vadd.f32 %v75_v52, %v74_v49 }
  0x23   :  { %v77_v57 = vrot.slane %v76_v55, 2 }
  0x25   :  { %v110_v35 = vpop.eup %109  ;;  %v78_v58 = vadd.f32 %v77_v57, %v76_v55 }
  0x26   :  { %v112_v38 = vpop.eup %111 }
  0x27   :  { %v114_v40 = vpop.eup %113  ;;  %v40_v41 = vadd.f32 %v112_v38, %v110_v35  ;;  %v79_v59 = vrot.slane %v78_v58, 1 }
  0x28   :  { %v116_v42 = vpop.eup %115 }
  0x29   :  { %v41_v43 = vadd.f32 %v114_v40, %v40_v41  ;;  %v42_v44 = vsel %vm17_vm0, %v116_v42, 0.0  ;;  %v80_v61 = vadd.f32 %v79_v59, %v78_v58 }
  0x2b   :  { %v43_v47 = vadd.f32 %v42_v44, %v41_v43 }
  0x2d   :  { %v44_v48 = vrot.slane %v43_v47, 4 }
  0x2f   :  { %v45_v50 = vadd.f32 %v44_v48, %v43_v47 }
  0x31   :  { %v46_v51 = vrot.slane %v45_v50, 2 }
  0x33   :  { %v47_v53 = vadd.f32 %v46_v51, %v45_v50 }
  0x35   :  { %v48_v54 = vrot.slane %v47_v53, 1 }
  0x37   :  { %v49_v56 = vadd.f32 %v48_v54, %v47_v53 }
  0x39   :  { %117 = vlog2.f32 %v49_v56 }
  0x46   :  { %v118_v62 = vpop.eup %117 }
  0x47   :  { %v82_v63 = vmul.f32 0.6931472, %v118_v62 }
  0x49   :  { %v83_v0 = vsub.f32 %v82_v63, %v80_v61 }
  0x4b   :  { %v90_v1 = vsel %vm89_vm5, %v83_v0, 0.0 }
  0x4c   :  { %91 = vst [vmem:[#allocation2] sm:$0x1] %v90_v1 }
  0x4d   :  { %130 = shalt.err (!%p127_p4)
}
  0x4e   :  { %101 = dma.vmem_to_hbm [thread:$0]  %s99_s18, 16, %s181_s2, [#allocation3]  }
  0x4f   :  { %139 = dma.done.wait [#allocation3], 16  }
  0x50   :  { %140 = vsyncadd [#allocation3], 4294967280 }
  0x51   :  { %105 = vsyncpa [#allocation3], 1 }

</bundles_post_ra>
